<compile_context>
chip_gen: v6e
topology: v6e:2x2x1
jax: 0.10.0
libtpu: 0.0.40
codegen_flags: <defaults>
</compile_context>

<pallas_src>
import jax
import jax.numpy as jnp
from jax.experimental import pallas as pl
from jax.experimental.pallas import tpu as pltpu

# logical dims (PyTorch module)
D_IN, H1, H2, H3, D_OUT = 400, 256, 128, 3, 5
# lane-dense padded dims used inside the kernel
D_IN_P, H3_P, D_OUT_P = 512, 128, 128


def _round_up(x, m):
    return (x + m - 1) // m * m


def mlp_kernel(x_ref, year_ref,
               w1_ref, b1_ref,
               w2_ref, b2_ref,
               w3_ref, b3_ref,
               w4a_ref, w4b_ref, b4_ref,
               out_ref):
    # L1: bf16 x / bf16 W1 on the MXU, f32 accumulate, f32 bias + relu
    h = jnp.dot(x_ref[...], w1_ref[...],
                preferred_element_type=jnp.float32) + b1_ref[...]
    h = jnp.maximum(h, 0.0)

    # L2: bf16 MXU inputs, f32 accumulate / elementwise
    h = jnp.dot(h.astype(jnp.bfloat16), w2_ref[...],
                preferred_element_type=jnp.float32) + b2_ref[...]
    h = jnp.maximum(h, 0.0)

    # L3 (padded 128 -> 128, lane-dense; padded columns are exact zeros)
    h = jnp.dot(h, w3_ref[...],
                preferred_element_type=jnp.float32) + b3_ref[...]
    h = jnp.maximum(h, 0.0)

    # L4 on concat([h, year]):  h @ W4a + year * w4b_row + b4   (exact split)
    out = (jnp.dot(h, w4a_ref[...], preferred_element_type=jnp.float32)
           + year_ref[...] * w4b_ref[...]      # (TB,1) * (1,128) broadcast
           + b4_ref[...])
    out_ref[...] = out.astype(out_ref.dtype)


def mlp_forward(naics_code_vec, year, params, *, max_batch_tile=1024):
    (w1t, b1, w2t, b2, w3t, b3, w4at, w4b_row, b4) = params
    B = naics_code_vec.shape[0]

    # batch tile: whole (8-padded) batch when small, else 1024-row tiles
    tb = min(_round_up(B, 8), max_batch_tile)
    b_pad = _round_up(B, tb)
    grid = (b_pad // tb,)

    # host-side padding: batch -> b_pad, features 400 -> 512, cast x to bf16
    x = jnp.zeros((b_pad, D_IN_P), jnp.bfloat16)
    x = x.at[:B, :D_IN].set(naics_code_vec.astype(jnp.bfloat16))
    yr = jnp.zeros((b_pad, 1), jnp.float32).at[:B, :].set(
        year.astype(jnp.float32))

    in_specs = [
        # streamed per batch tile
        pl.BlockSpec((tb, D_IN_P), lambda i: (i, 0)),   # x
        pl.BlockSpec((tb, 1),      lambda i: (i, 0)),   # year
        # VMEM-resident weights/biases (constant index_map)
        pl.BlockSpec((D_IN_P, H1), lambda i: (0, 0)),   # W1^T (bf16)
        pl.BlockSpec((1, H1),      lambda i: (0, 0)),   # b1
        pl.BlockSpec((H1, H2),     lambda i: (0, 0)),   # W2^T (bf16)
        pl.BlockSpec((1, H2),      lambda i: (0, 0)),   # b2
        pl.BlockSpec((H2, H3_P),   lambda i: (0, 0)),   # W3^T (padded)
        pl.BlockSpec((1, H3_P),    lambda i: (0, 0)),   # b3  (padded)
        pl.BlockSpec((H3_P, D_OUT_P), lambda i: (0, 0)),  # W4a^T (padded)
        pl.BlockSpec((1, D_OUT_P), lambda i: (0, 0)),   # w4 year row (padded)
        pl.BlockSpec((1, D_OUT_P), lambda i: (0, 0)),   # b4 (padded)
    ]
    out_specs = pl.BlockSpec((tb, D_OUT_P), lambda i: (i, 0))

    flops = 2 * b_pad * (D_IN_P * H1 + H1 * H2 + H2 * H3_P + H3_P * D_OUT_P)
    bytes_accessed = (x.size * 2 + yr.size * 4
                      + (w1t.size + w2t.size) * 2
                      + (b1.size + b2.size + w3t.size + b3.size
                         + w4at.size + w4b_row.size + b4.size) * 4
                      + b_pad * D_OUT_P * 4)
    cost = pl.CostEstimate(flops=flops, transcendentals=0,
                           bytes_accessed=bytes_accessed)

    out_padded = pl.pallas_call(
        mlp_kernel,
        out_shape=jax.ShapeDtypeStruct((b_pad, D_OUT_P), jnp.float32),
        grid=grid,
        in_specs=in_specs,
        out_specs=out_specs,
        compiler_params=pltpu.CompilerParams(
            dimension_semantics=("parallel",),      # 2-TC megacore on v7x
            vmem_limit_bytes=48 * 1024 * 1024),     # fits v7x's 64 MiB VMEM
        cost_estimate=cost,
    )(x, yr, w1t, b1, w2t, b2, w3t, b3, w4at, w4b_row, b4)

    return out_padded[:B, :D_OUT]


def init_params(key):
    """Deterministic synthetic parameters (PyTorch nn.Linear-like scaling)."""
    def linear(key, fan_in, fan_out):
        kw, kb = jax.random.split(key)
        bound = 1.0 / jnp.sqrt(fan_in)
        w = jax.random.uniform(kw, (fan_out, fan_in), jnp.float32, -bound, bound)
        b = jax.random.uniform(kb, (fan_out,), jnp.float32, -bound, bound)
        return w, b

    k1, k2, k3, k4 = jax.random.split(key, 4)
    w1, b1 = linear(k1, D_IN, H1)
    w2, b2 = linear(k2, H1, H2)
    w3, b3 = linear(k3, H2, H3)
    w4, b4 = linear(k4, H3 + 1, D_OUT)
    torch_params = (w1, b1, w2, b2, w3, b3, w4, b4)

    # ---- pack for the kernel: transpose, zero-pad lane dims, bf16 big weights
    w1t = (jnp.zeros((D_IN_P, H1), jnp.float32)
           .at[:D_IN, :].set(w1.T).astype(jnp.bfloat16))          # (512, 256)
    w2t = w2.T.astype(jnp.bfloat16)                               # (256, 128)
    w3t = jnp.zeros((H2, H3_P), jnp.float32).at[:, :H3].set(w3.T)  # (128, 128)
    b3p = jnp.zeros((1, H3_P), jnp.float32).at[:, :H3].set(b3)
    w4a = (jnp.zeros((H3_P, D_OUT_P), jnp.float32)
           .at[:H3, :D_OUT].set(w4[:, :H3].T))                    # (128, 128)
    w4b = (jnp.zeros((1, D_OUT_P), jnp.float32)
           .at[:, :D_OUT].set(w4[:, H3:].T))                      # (1, 128)
    b4p = jnp.zeros((1, D_OUT_P), jnp.float32).at[:, :D_OUT].set(b4)

    kernel_params = (w1t, b1.reshape(1, H1), w2t, b2.reshape(1, H2),
                     w3t, b3p, w4a, w4b, b4p)
    return kernel_params, torch_params


def reference_forward(x, year, torch_params):
    w1, b1, w2, b2, w3, b3, w4, b4 = torch_params
    h = jnp.maximum(x @ w1.T + b1, 0.0)
    h = jnp.maximum(h @ w2.T + b2, 0.0)
    h = jnp.maximum(h @ w3.T + b3, 0.0)
    cat = jnp.concatenate([h, year], axis=1)
    return cat @ w4.T + b4


if __name__ == "__main__":
    key = jax.random.PRNGKey(0)
    kp, kx, ky = jax.random.split(key, 3)

    B = 8
    naics_code_vec = jax.random.normal(kx, (B, D_IN), jnp.float32)
    year = jax.random.uniform(ky, (B, 1), jnp.float32, 0.0, 1.0)

    params, torch_params = init_params(kp)

    out = mlp_forward(naics_code_vec, year, params)
    out = jax.block_until_ready(out)

    ref = reference_forward(naics_code_vec, year, torch_params)
    assert out.shape == (B, D_OUT)
    # bf16 streaming of x/W1/W2 (f32 accumulation) -> loosened tolerance
    assert jnp.allclose(out, ref, atol=5e-2, rtol=5e-2), "mismatch vs reference"

    print("KERNEL_OK")
</pallas_src>

<mosaic_0001>
module attributes {stable_mosaic.version = 11 : i64} {
  func.func @mlp_kernel(%arg0: i32, %arg1: memref<8x512xbf16, #tpu.memory_space<vmem>>, %arg2: memref<8x1xf32, #tpu.memory_space<vmem>>, %arg3: memref<512x256xbf16, #tpu.memory_space<vmem>>, %arg4: memref<1x256xf32, #tpu.memory_space<vmem>>, %arg5: memref<256x128xbf16, #tpu.memory_space<vmem>>, %arg6: memref<1x128xf32, #tpu.memory_space<vmem>>, %arg7: memref<128x128xf32, #tpu.memory_space<vmem>>, %arg8: memref<1x128xf32, #tpu.memory_space<vmem>>, %arg9: memref<128x128xf32, #tpu.memory_space<vmem>>, %arg10: memref<1x128xf32, #tpu.memory_space<vmem>>, %arg11: memref<1x128xf32, #tpu.memory_space<vmem>>, %arg12: memref<8x128xf32, #tpu.memory_space<vmem>>) attributes {dimension_semantics = [#tpu.dimension_semantics<parallel>], iteration_bounds = array<i64: 1>, scalar_prefetch = 0 : i64, scratch_operands = 0 : i64, tpu.core_type = #tpu.core_type<tc>, window_params = [{transform_indices = @transform_0, window_bounds = array<i64: 8, 512>}, {transform_indices = @transform_1, window_bounds = array<i64: 8, 1>}, {pipeline_mode = #tpu.pipeline_mode<synchronous>, transform_indices = @transform_2, window_bounds = array<i64: 512, 256>}, {pipeline_mode = #tpu.pipeline_mode<synchronous>, transform_indices = @transform_3, window_bounds = array<i64: 1, 256>}, {pipeline_mode = #tpu.pipeline_mode<synchronous>, transform_indices = @transform_4, window_bounds = array<i64: 256, 128>}, {pipeline_mode = #tpu.pipeline_mode<synchronous>, transform_indices = @transform_5, window_bounds = array<i64: 1, 128>}, {pipeline_mode = #tpu.pipeline_mode<synchronous>, transform_indices = @transform_6, window_bounds = array<i64: 128, 128>}, {pipeline_mode = #tpu.pipeline_mode<synchronous>, transform_indices = @transform_7, window_bounds = array<i64: 1, 128>}, {pipeline_mode = #tpu.pipeline_mode<synchronous>, transform_indices = @transform_8, window_bounds = array<i64: 128, 128>}, {pipeline_mode = #tpu.pipeline_mode<synchronous>, transform_indices = @transform_9, window_bounds = array<i64: 1, 128>}, {pipeline_mode = #tpu.pipeline_mode<synchronous>, transform_indices = @transform_10, window_bounds = array<i64: 1, 128>}, {transform_indices = @transform_11, window_bounds = array<i64: 8, 128>}]} {
    %c0 = arith.constant 0 : index
    %c0_0 = arith.constant 0 : index
    %0 = vector.load %arg1[%c0, %c0_0] : memref<8x512xbf16, #tpu.memory_space<vmem>>, vector<8x512xbf16>
    %c0_1 = arith.constant 0 : index
    %c0_2 = arith.constant 0 : index
    %1 = vector.load %arg3[%c0_1, %c0_2] : memref<512x256xbf16, #tpu.memory_space<vmem>>, vector<512x256xbf16>
    %cst = arith.constant dense<0.000000e+00> : vector<8x256xf32>
    %2 = tpu.matmul %0, %1, %cst {dimension_numbers = #tpu.dot_dimension_numbers<[1], [0], [0], [1], [0, 0, 1, 1], [], []>} : vector<8x512xbf16>, vector<512x256xbf16>, vector<8x256xf32> -> vector<8x256xf32>
    %c0_3 = arith.constant 0 : index
    %c0_4 = arith.constant 0 : index
    %3 = vector.load %arg4[%c0_3, %c0_4] : memref<1x256xf32, #tpu.memory_space<vmem>>, vector<1x256xf32>
    %4 = vector.broadcast %3 : vector<1x256xf32> to vector<8x256xf32>
    %5 = arith.addf %2, %4 : vector<8x256xf32>
    %cst_5 = arith.constant 0.000000e+00 : f32
    %6 = vector.broadcast %cst_5 : f32 to vector<8x256xf32>
    %7 = arith.maximumf %5, %6 : vector<8x256xf32>
    %8 = arith.truncf %7 : vector<8x256xf32> to vector<8x256xbf16>
    %c0_6 = arith.constant 0 : index
    %c0_7 = arith.constant 0 : index
    %9 = vector.load %arg5[%c0_6, %c0_7] : memref<256x128xbf16, #tpu.memory_space<vmem>>, vector<256x128xbf16>
    %cst_8 = arith.constant dense<0.000000e+00> : vector<8x128xf32>
    %10 = tpu.matmul %8, %9, %cst_8 {dimension_numbers = #tpu.dot_dimension_numbers<[1], [0], [0], [1], [0, 0, 1, 1], [], []>} : vector<8x256xbf16>, vector<256x128xbf16>, vector<8x128xf32> -> vector<8x128xf32>
    %c0_9 = arith.constant 0 : index
    %c0_10 = arith.constant 0 : index
    %11 = vector.load %arg6[%c0_9, %c0_10] : memref<1x128xf32, #tpu.memory_space<vmem>>, vector<1x128xf32>
    %12 = vector.broadcast %11 : vector<1x128xf32> to vector<8x128xf32>
    %13 = arith.addf %10, %12 : vector<8x128xf32>
    %cst_11 = arith.constant 0.000000e+00 : f32
    %14 = vector.broadcast %cst_11 : f32 to vector<8x128xf32>
    %15 = arith.maximumf %13, %14 : vector<8x128xf32>
    %c0_12 = arith.constant 0 : index
    %c0_13 = arith.constant 0 : index
    %16 = vector.load %arg7[%c0_12, %c0_13] : memref<128x128xf32, #tpu.memory_space<vmem>>, vector<128x128xf32>
    %cst_14 = arith.constant dense<0.000000e+00> : vector<8x128xf32>
    %17 = tpu.matmul %15, %16, %cst_14 {dimension_numbers = #tpu.dot_dimension_numbers<[1], [0], [0], [1], [0, 0, 1, 1], [], []>} : vector<8x128xf32>, vector<128x128xf32>, vector<8x128xf32> -> vector<8x128xf32>
    %c0_15 = arith.constant 0 : index
    %c0_16 = arith.constant 0 : index
    %18 = vector.load %arg8[%c0_15, %c0_16] : memref<1x128xf32, #tpu.memory_space<vmem>>, vector<1x128xf32>
    %19 = vector.broadcast %18 : vector<1x128xf32> to vector<8x128xf32>
    %20 = arith.addf %17, %19 : vector<8x128xf32>
    %cst_17 = arith.constant 0.000000e+00 : f32
    %21 = vector.broadcast %cst_17 : f32 to vector<8x128xf32>
    %22 = arith.maximumf %20, %21 : vector<8x128xf32>
    %c0_18 = arith.constant 0 : index
    %c0_19 = arith.constant 0 : index
    %23 = vector.load %arg9[%c0_18, %c0_19] : memref<128x128xf32, #tpu.memory_space<vmem>>, vector<128x128xf32>
    %cst_20 = arith.constant dense<0.000000e+00> : vector<8x128xf32>
    %24 = tpu.matmul %22, %23, %cst_20 {dimension_numbers = #tpu.dot_dimension_numbers<[1], [0], [0], [1], [0, 0, 1, 1], [], []>} : vector<8x128xf32>, vector<128x128xf32>, vector<8x128xf32> -> vector<8x128xf32>
    %c0_21 = arith.constant 0 : index
    %c0_22 = arith.constant 0 : index
    %25 = vector.load %arg2[%c0_21, %c0_22] : memref<8x1xf32, #tpu.memory_space<vmem>>, vector<8x1xf32>
    %c0_23 = arith.constant 0 : index
    %c0_24 = arith.constant 0 : index
    %26 = vector.load %arg10[%c0_23, %c0_24] : memref<1x128xf32, #tpu.memory_space<vmem>>, vector<1x128xf32>
    %27 = vector.broadcast %25 : vector<8x1xf32> to vector<8x128xf32>
    %28 = vector.broadcast %26 : vector<1x128xf32> to vector<8x128xf32>
    %29 = arith.mulf %27, %28 : vector<8x128xf32>
    %30 = arith.addf %24, %29 : vector<8x128xf32>
    %c0_25 = arith.constant 0 : index
    %c0_26 = arith.constant 0 : index
    %31 = vector.load %arg11[%c0_25, %c0_26] : memref<1x128xf32, #tpu.memory_space<vmem>>, vector<1x128xf32>
    %32 = vector.broadcast %31 : vector<1x128xf32> to vector<8x128xf32>
    %33 = arith.addf %30, %32 : vector<8x128xf32>
    %c0_27 = arith.constant 0 : index
    %c0_28 = arith.constant 0 : index
    %34 = vector.load %arg12[%c0_27, %c0_28] : memref<8x128xf32, #tpu.memory_space<vmem>>, vector<8x128xf32>
    tpu.vector_store %arg12[%c0_27, %c0_28], %33 {strides = array<i32>} : memref<8x128xf32, #tpu.memory_space<vmem>>, vector<8x128xf32>,
    return
  }
  func.func @transform_0(%arg0: i32) -> (i32, i32) {
    %c0_i32 = arith.constant 0 : i32
    %c0_i32_0 = arith.constant 0 : i32
    return %arg0, %c0_i32 : i32, i32
  }
  func.func @transform_1(%arg0: i32) -> (i32, i32) {
    %c0_i32 = arith.constant 0 : i32
    %c0_i32_0 = arith.constant 0 : i32
    return %arg0, %c0_i32 : i32, i32
  }
  func.func @transform_2(%arg0: i32) -> (i32, i32) {
    %c0_i32 = arith.constant 0 : i32
    %c0_i32_0 = arith.constant 0 : i32
    %c0_i32_1 = arith.constant 0 : i32
    return %c0_i32, %c0_i32_0 : i32, i32
  }
  func.func @transform_3(%arg0: i32) -> (i32, i32) {
    %c0_i32 = arith.constant 0 : i32
    %c0_i32_0 = arith.constant 0 : i32
    %c0_i32_1 = arith.constant 0 : i32
    return %c0_i32, %c0_i32_0 : i32, i32
  }
  func.func @transform_4(%arg0: i32) -> (i32, i32) {
    %c0_i32 = arith.constant 0 : i32
    %c0_i32_0 = arith.constant 0 : i32
    %c0_i32_1 = arith.constant 0 : i32
    return %c0_i32, %c0_i32_0 : i32, i32
  }
  func.func @transform_5(%arg0: i32) -> (i32, i32) {
    %c0_i32 = arith.constant 0 : i32
    %c0_i32_0 = arith.constant 0 : i32
    %c0_i32_1 = arith.constant 0 : i32
    return %c0_i32, %c0_i32_0 : i32, i32
  }
  func.func @transform_6(%arg0: i32) -> (i32, i32) {
    %c0_i32 = arith.constant 0 : i32
    %c0_i32_0 = arith.constant 0 : i32
    %c0_i32_1 = arith.constant 0 : i32
    return %c0_i32, %c0_i32_0 : i32, i32
  }
  func.func @transform_7(%arg0: i32) -> (i32, i32) {
    %c0_i32 = arith.constant 0 : i32
    %c0_i32_0 = arith.constant 0 : i32
    %c0_i32_1 = arith.constant 0 : i32
    return %c0_i32, %c0_i32_0 : i32, i32
  }
  func.func @transform_8(%arg0: i32) -> (i32, i32) {
    %c0_i32 = arith.constant 0 : i32
    %c0_i32_0 = arith.constant 0 : i32
    %c0_i32_1 = arith.constant 0 : i32
    return %c0_i32, %c0_i32_0 : i32, i32
  }
  func.func @transform_9(%arg0: i32) -> (i32, i32) {
    %c0_i32 = arith.constant 0 : i32
    %c0_i32_0 = arith.constant 0 : i32
    %c0_i32_1 = arith.constant 0 : i32
    return %c0_i32, %c0_i32_0 : i32, i32
  }
  func.func @transform_10(%arg0: i32) -> (i32, i32) {
    %c0_i32 = arith.constant 0 : i32
    %c0_i32_0 = arith.constant 0 : i32
    %c0_i32_1 = arith.constant 0 : i32
    return %c0_i32, %c0_i32_0 : i32, i32
  }
  func.func @transform_11(%arg0: i32) -> (i32, i32) {
    %c0_i32 = arith.constant 0 : i32
    %c0_i32_0 = arith.constant 0 : i32
    return %arg0, %c0_i32 : i32, i32
  }
}

</mosaic_0001>

<bundles_post_ra>
// kernel: tpu_custom_call.1
= control target key start
LH: loop header
LB: loop body
LE: loop exit
PB: predicated region body
PF: predicated region fallthrough
CT: control target
= control target key end

     0   :  { %16 = vsyncpa [#allocation3], 0  ;;  %s1624_s0 = inlined_call_operand.hbm [shape: bf16[8,512], index: 0, kind: input, shape index: {}]   ;;  %s1625_s1 = inlined_call_operand.vmem [shape: f32[8,1], index: 1, kind: input, shape index: {}]   ;;  %s1626_s2 = inlined_call_operand.hbm [shape: bf16[512,256], index: 2, kind: input, shape index: {}]   ;;  %s1627_s3 = inlined_call_operand.vmem [shape: f32[1,256], index: 3, kind: input, shape index: {}]   ;;  %s1628_s4 = inlined_call_operand.hbm [shape: bf16[256,128], index: 4, kind: input, shape index: {}]   ;;  %s1629_s5 = inlined_call_operand.vmem [shape: f32[1,128], index: 5, kind: input, shape index: {}]   ;;  %s1630_s6 = inlined_call_operand.hbm [shape: f32[128,128], index: 6, kind: input, shape index: {}]   ;;  %s1631_s7 = inlined_call_operand.vmem [shape: f32[1,128], index: 7, kind: input, shape index: {}]   ;;  %s1632_s8 = inlined_call_operand.hbm [shape: f32[128,128], index: 8, kind: input, shape index: {}]   ;;  %s1633_s9 = inlined_call_operand.vmem [shape: f32[1,128], index: 9, kind: input, shape index: {}]   ;;  %s1634_s10 = inlined_call_operand.vmem [shape: f32[1,128], index: 10, kind: input, shape index: {}]   ;;  %s1635_s11 = inlined_call_operand.hbm [shape: f32[8,128], index: 11, kind: output, shape index: {}]  }
   0x1   :  { %17 = vsyncpa [#allocation6], 0 }
   0x2   :  { %18 = vsyncpa [#allocation9], 0 }
   0x3   :  { %19 = vsyncpa [#allocation4], 0  ;;  %s1472_s17 = smov [#allocation5]  }
   0x4   :  { %s37_s18 = sshll.u32 %s1472_s17, 4  ;;  %s38_s18 = int_to_ptr.vmem [resolvable:$true] %s37_s18 }
   0x5   :  { %s1352_s19 = scalar_lea.vmem %s38_s18, 8192  ;;  %p1357_p1 = scmp.lt.s32.totalorder %s38_s18, %s38_s18 }
   0x6   :  { %p1353_p0 = scmp.ne.s32.totalorder %s38_s18, %s1352_s19  ;;  %p1358_p2 = scmp.lt.s32.totalorder %s1352_s19, %s1352_s19 }
   0x8   :  { %p1359_p3 = por %p1358_p2, %p1357_p1 }
   0xa   :  { %p1360_p4 = pnand %p1359_p3, %p1353_p0 }
   0xc   :  { %1363 = shalt.err (!%p1360_p4)
}
   0xd   :  { %s1473_s20 = smov 128   ;;  %s1474_s21 = smov 8  }
   0xe   :  { %43 = dma.hbm_to_vmem [thread:$0]  %s1626_s2, 8192, %s38_s18, [#allocation6], %s1473_s20, %s1473_s20, %s1474_s21  }
   0xf   :  { %s1475_s24 = smov [#allocation8]   ;;  %s1476_s26 = smov [#allocation2]  }
  0x10   :  { %s65_s25 = sshll.u32 %s1475_s24, 4  ;;  %s26_s27 = sshll.u32 %s1476_s26, 4  ;;  %s66_s25 = int_to_ptr.vmem [resolvable:$true] %s65_s25  ;;  %s27_s27 = int_to_ptr.vmem [resolvable:$true] %s26_s27 }
  0x11   :  { %s1372_s28 = scalar_lea.vmem %s66_s25, 2048  ;;  %p1377_p6 = scmp.lt.s32.totalorder %s66_s25, %s66_s25 }
  0x12   :  { %p1373_p5 = scmp.ne.s32.totalorder %s66_s25, %s1372_s28  ;;  %p1378_p7 = scmp.lt.s32.totalorder %s1372_s28, %s1372_s28 }
  0x14   :  { %p1379_p8 = por %p1378_p7, %p1377_p6 }
  0x16   :  { %p1380_p9 = pnand %p1379_p8, %p1373_p5 }
  0x18   :  { %1383 = shalt.err (!%p1380_p9)
}
  0x19   :  { %71 = dma.hbm_to_vmem [thread:$0]  %s1630_s6, 2048, %s66_s25, [#allocation9], %s1473_s20, %s1473_s20, %s1474_s21  }
  0x1a   :  { %s1392_s2 = scalar_lea.vmem %s27_s27, 256  ;;  %p1397_p11 = scmp.lt.s32.totalorder %s27_s27, %s27_s27 }
  0x1b   :  { %p1393_p10 = scmp.ne.s32.totalorder %s27_s27, %s1392_s2  ;;  %p1398_p12 = scmp.lt.s32.totalorder %s1392_s2, %s1392_s2 }
  0x1d   :  { %p1399_p13 = por %p1398_p12, %p1397_p11 }
  0x1f   :  { %p1400_p0 = pnand %p1399_p13, %p1393_p10 }
  0x21   :  { %1403 = shalt.err (!%p1400_p0)
}
  0x22   :  { %29 = dma.hbm_to_vmem [thread:$0]  %s1624_s0, 256, %s27_s27, [#allocation3]  }
  0x23   :  { %s1477_s14 = smov [#allocation7]  }
  0x24   :  { %s51_s15 = sshll.u32 %s1477_s14, 4  ;;  %s52_s15 = int_to_ptr.vmem [resolvable:$true] %s51_s15 }
  0x25   :  { %s1412_s16 = scalar_lea.vmem %s52_s15, 2048  ;;  %p1417_p2 = scmp.lt.s32.totalorder %s52_s15, %s52_s15 }
  0x26   :  { %p1413_p1 = scmp.ne.s32.totalorder %s52_s15, %s1412_s16  ;;  %p1418_p3 = scmp.lt.s32.totalorder %s1412_s16, %s1412_s16 }
  0x28   :  { %p1419_p4 = por %p1418_p3, %p1417_p2 }
  0x2a   :  { %p1420_p5 = pnand %p1419_p4, %p1413_p1 }
  0x2c   :  { %1423 = shalt.err (!%p1420_p5)
}
  0x2d   :  { %s1478_s6 = smov 64   ;;  %s1479_s17 = smov 4  }
  0x2e   :  { %57 = dma.hbm_to_vmem [thread:$0]  %s1628_s4, 2048, %s52_s15, [#allocation6], %s1478_s6, %s1478_s6, %s1479_s17  }
  0x2f   :  { %s1480_s22 = smov [#allocation10]  }
  0x30   :  { %s79_s23 = sshll.u32 %s1480_s22, 4  ;;  %s80_s23 = int_to_ptr.vmem [resolvable:$true] %s79_s23 }
  0x31   :  { %s1432_s0 = scalar_lea.vmem %s80_s23, 2048  ;;  %p1437_p7 = scmp.lt.s32.totalorder %s80_s23, %s80_s23 }
  0x32   :  { %p1433_p6 = scmp.ne.s32.totalorder %s80_s23, %s1432_s0  ;;  %p1438_p8 = scmp.lt.s32.totalorder %s1432_s0, %s1432_s0 }
  0x34   :  { %p1439_p9 = por %p1438_p8, %p1437_p7 }
  0x36   :  { %p1440_p10 = pnand %p1439_p9, %p1433_p6 }
  0x38   :  { %1443 = shalt.err (!%p1440_p10)
}
  0x39   :  { %85 = dma.hbm_to_vmem [thread:$0]  %s1632_s8, 2048, %s80_s23, [#allocation9], %s1473_s20, %s1473_s20, %s1474_s21  }
  0x3a   :  { %1464 = dma.done.wait [#allocation3], 256  }
  0x3b   :  { %1465 = vsyncadd [#allocation3], 4294967040 }
  0x3c   :  { %1466 = dma.done.wait [#allocation6], 10240  }
  0x3d   :  { %1467 = vsyncadd [#allocation6], 4294957056 }
  0x3e   :  { %1468 = dma.done.wait [#allocation9], 4096  }
  0x3f   :  { %1469 = vsyncadd [#allocation9], 4294963200  ;;  %v1228_v0 = vld [vmem:[#allocation5 + $0x74] ss:$8 sps:$4 sm:$0xff]   ;;  %v1232_v2 = vld [vmem:[#allocation5 + $0x70] ss:$8 sps:$4 sm:$0xff]  }
  0x40   :  { %v1230_v1 = vld [vmem:[#allocation5 + $0x174] ss:$8 sps:$4 sm:$0xff]   ;;  %518 = vmatprep.subr.bf16.mxu0 %v1228_v0  ;;  %v1233_v3 = vld [vmem:[#allocation5 + $0x170] ss:$8 sps:$4 sm:$0xff]   ;;  %v1234_v4 = vld [vmem:[#allocation5 + $0x64] ss:$8 sps:$4 sm:$0xff]  }
  0x41   :  { %559 = vmatprep.subr.bf16.mxu1 %v1230_v1  ;;  %519 = vmatpush1.bf16.msra.mxu0 %v1232_v2  ;;  %v1236_v5 = vld [vmem:[#allocation5 + $0x164] ss:$8 sps:$4 sm:$0xff]   ;;  %v1238_v6 = vld [vmem:[#allocation5 + $0x60] ss:$8 sps:$4 sm:$0xff]   ;;  %v1240_v8 = vld [vmem:[#allocation5 + $0x54] ss:$8 sps:$4 sm:$0xff]  }
  0x42   :  { %560 = vmatpush1.bf16.msra.mxu1 %v1233_v3  ;;  %520 = vmatprep.subr.bf16.mxu0 %v1234_v4  ;;  %v1239_v7 = vld [vmem:[#allocation5 + $0x160] ss:$8 sps:$4 sm:$0xff]   ;;  %v1242_v9 = vld [vmem:[#allocation5 + $0x154] ss:$8 sps:$4 sm:$0xff]   ;;  %v1244_v10 = vld [vmem:[#allocation5 + $0x50] ss:$8 sps:$4 sm:$0xff]  }
  0x43   :  { %561 = vmatprep.subr.bf16.mxu1 %v1236_v5  ;;  %v1245_v11 = vld [vmem:[#allocation5 + $0x150] ss:$8 sps:$4 sm:$0xff]   ;;  %v1246_v12 = vld [vmem:[#allocation5 + $0x44] ss:$8 sps:$4 sm:$0xff]   ;;  %v1250_v14 = vld [vmem:[#allocation5 + $0x40] ss:$8 sps:$4 sm:$0xff]  }
  0x44   :  { %v1248_v13 = vld [vmem:[#allocation5 + $0x144] ss:$8 sps:$4 sm:$0xff]   ;;  %v1251_v15 = vld [vmem:[#allocation5 + $0x140] ss:$8 sps:$4 sm:$0xff]   ;;  %v1252_v16 = vld [vmem:[#allocation5 + $0x34] ss:$8 sps:$4 sm:$0xff]  }
  0x45   :  { %521 = vmatpush1.bf16.msra.mxu0 %v1238_v6  ;;  %v1254_v17 = vld [vmem:[#allocation5 + $0x134] ss:$8 sps:$4 sm:$0xff]   ;;  %v1256_v18 = vld [vmem:[#allocation5 + $0x30] ss:$8 sps:$4 sm:$0xff]   ;;  %v1258_v20 = vld [vmem:[#allocation5 + $0x24] ss:$8 sps:$4 sm:$0xff]  }
  0x46   :  { %562 = vmatpush1.bf16.msra.mxu1 %v1239_v7  ;;  %522 = vmatprep.subr.bf16.mxu0 %v1240_v8  ;;  %v1257_v19 = vld [vmem:[#allocation5 + $0x130] ss:$8 sps:$4 sm:$0xff]   ;;  %v1260_v21 = vld [vmem:[#allocation5 + $0x124] ss:$8 sps:$4 sm:$0xff]   ;;  %v1262_v22 = vld [vmem:[#allocation5 + $0x20] ss:$8 sps:$4 sm:$0xff]  }
  0x47   :  { %563 = vmatprep.subr.bf16.mxu1 %v1242_v9  ;;  %v1263_v23 = vld [vmem:[#allocation5 + $0x120] ss:$8 sps:$4 sm:$0xff]   ;;  %v1264_v24 = vld [vmem:[#allocation5 + $0x14] ss:$8 sps:$4 sm:$0xff]   ;;  %v1268_v26 = vld [vmem:[#allocation5 + $0x10] ss:$8 sps:$4 sm:$0xff]  }
  0x48   :  { %v1266_v25 = vld [vmem:[#allocation5 + $0x114] ss:$8 sps:$4 sm:$0xff]   ;;  %v1269_v27 = vld [vmem:[#allocation5 + $0x110] ss:$8 sps:$4 sm:$0xff]   ;;  %v1270_v28 = vld [vmem:[#allocation5 + $0x4] ss:$8 sps:$4 sm:$0xff]  }
  0x49   :  { %523 = vmatpush1.bf16.msra.mxu0 %v1244_v10  ;;  %v1272_v29 = vld [vmem:[#allocation5 + $0x104] ss:$8 sps:$4 sm:$0xff]   ;;  %v1274_v30 = vld [vmem:[#allocation5] ss:$8 sps:$4 sm:$0xff]   ;;  %v1276_v32 = vld [vmem:[#allocation5 + $0xf4] ss:$8 sps:$4 sm:$0xff]  }
  0x4a   :  { %564 = vmatpush1.bf16.msra.mxu1 %v1245_v11  ;;  %524 = vmatprep.subr.bf16.mxu0 %v1246_v12  ;;  %v1275_v31 = vld [vmem:[#allocation5 + $0x100] ss:$8 sps:$4 sm:$0xff]   ;;  %v1278_v33 = vld [vmem:[#allocation5 + $0x1f4] ss:$8 sps:$4 sm:$0xff]   ;;  %v1280_v34 = vld [vmem:[#allocation5 + $0xf0] ss:$8 sps:$4 sm:$0xff]  }
  0x4b   :  { %565 = vmatprep.subr.bf16.mxu1 %v1248_v13  ;;  %v1281_v35 = vld [vmem:[#allocation5 + $0x1f0] ss:$8 sps:$4 sm:$0xff]   ;;  %v1282_v36 = vld [vmem:[#allocation5 + $0xe4] ss:$8 sps:$4 sm:$0xff]   ;;  %v1286_v38 = vld [vmem:[#allocation5 + $0xe0] ss:$8 sps:$4 sm:$0xff]  }
  0x4c   :  { %v1284_v37 = vld [vmem:[#allocation5 + $0x1e4] ss:$8 sps:$4 sm:$0xff]   ;;  %v1287_v39 = vld [vmem:[#allocation5 + $0x1e0] ss:$8 sps:$4 sm:$0xff]   ;;  %v1288_v40 = vld [vmem:[#allocation5 + $0xd4] ss:$8 sps:$4 sm:$0xff]  }
  0x4d   :  { %525 = vmatpush1.bf16.msra.mxu0 %v1250_v14  ;;  %v1290_v41 = vld [vmem:[#allocation5 + $0x1d4] ss:$8 sps:$4 sm:$0xff]   ;;  %v1292_v42 = vld [vmem:[#allocation5 + $0xd0] ss:$8 sps:$4 sm:$0xff]   ;;  %v1294_v44 = vld [vmem:[#allocation5 + $0xc4] ss:$8 sps:$4 sm:$0xff]  }
  0x4e   :  { %566 = vmatpush1.bf16.msra.mxu1 %v1251_v15  ;;  %526 = vmatprep.subr.bf16.mxu0 %v1252_v16  ;;  %v1293_v43 = vld [vmem:[#allocation5 + $0x1d0] ss:$8 sps:$4 sm:$0xff]   ;;  %v1296_v45 = vld [vmem:[#allocation5 + $0x1c4] ss:$8 sps:$4 sm:$0xff]   ;;  %v1298_v46 = vld [vmem:[#allocation5 + $0xc0] ss:$8 sps:$4 sm:$0xff]  }
  0x4f   :  { %567 = vmatprep.subr.bf16.mxu1 %v1254_v17  ;;  %v1299_v47 = vld [vmem:[#allocation5 + $0x1c0] ss:$8 sps:$4 sm:$0xff]   ;;  %v106_v48 = vld [vmem:[#allocation2] sm:$0xff]  ;;  %v107_v50 = vld [vmem:[#allocation2 + $0x8] sm:$0xff]  ;;  %vm1482_vm0 = vmmov 0   ;;  %s1484_s2 = smov [#allocation11]  }
  0x50   :  { %v1001_v49 = vcombine.high %v106_v48, %v106_v48  ;;  %v1300_v51 = vld [vmem:[#allocation5 + $0xb4] ss:$8 sps:$4 sm:$0xff]   ;;  %v1003_v52 = vcombine.high %v107_v50, %v107_v50  ;;  %v1304_v54 = vld [vmem:[#allocation5 + $0xb0] ss:$8 sps:$4 sm:$0xff]   ;;  %v1306_v56 = vld [vmem:[#allocation5 + $0xa4] ss:$8 sps:$4 sm:$0xff]   ;;  %v1000_v5 = vcombine.low %v106_v48, %v106_v48  ;;  %v1002_v6 = vcombine.low %v107_v50, %v107_v50 }
  0x51   :  { %527 = vmatpush1.bf16.msra.mxu0 %v1256_v18  ;;  %v1302_v53 = vld [vmem:[#allocation5 + $0x1b4] ss:$8 sps:$4 sm:$0xff]   ;;  %v1305_v55 = vld [vmem:[#allocation5 + $0x1b0] ss:$8 sps:$4 sm:$0xff]   ;;  %v1308_v57 = vld [vmem:[#allocation5 + $0x1a4] ss:$8 sps:$4 sm:$0xff]  }
  0x52   :  { %568 = vmatpush1.bf16.msra.mxu1 %v1257_v19  ;;  %528 = vmatprep.subr.bf16.mxu0 %v1258_v20  ;;  %v1310_v58 = vld [vmem:[#allocation5 + $0xa0] ss:$8 sps:$4 sm:$0xff]   ;;  %v1312_v60 = vld [vmem:[#allocation5 + $0x94] ss:$8 sps:$4 sm:$0xff]   ;;  %v1316_v62 = vld [vmem:[#allocation5 + $0x90] ss:$8 sps:$4 sm:$0xff]  }
  0x53   :  { %569 = vmatprep.subr.bf16.mxu1 %v1260_v21  ;;  %550 = vmatprep.mubr.bf16.mxu0 %v1001_v49  ;;  %v1311_v59 = vld [vmem:[#allocation5 + $0x1a0] ss:$8 sps:$4 sm:$0xff]   ;;  %v1314_v61 = vld [vmem:[#allocation5 + $0x194] ss:$8 sps:$4 sm:$0xff]   ;;  %v1317_v63 = vld [vmem:[#allocation5 + $0x190] ss:$8 sps:$4 sm:$0xff]  }
  0x54   :  { %591 = vmatprep.mubr.bf16.mxu1 %v1003_v52  ;;  %v1318_v0 = vld [vmem:[#allocation5 + $0x84] ss:$8 sps:$4 sm:$0xff]   ;;  %v1322_v2 = vld [vmem:[#allocation5 + $0x80] ss:$8 sps:$4 sm:$0xff]   ;;  %v1328_v4 = vld [vmem:[#allocation7 + $0x78] sm:$0xff]   ;;  %s989_s12 = sshll.u32 %s1484_s2, 4  ;;  %s990_s12 = int_to_ptr.vmem [resolvable:$true] %s989_s12 }
  0x55   :  { %529 = vmatpush1.bf16.msra.mxu0 %v1262_v22  ;;  %v1320_v1 = vld [vmem:[#allocation5 + $0x184] ss:$8 sps:$4 sm:$0xff]   ;;  %v1323_v3 = vld [vmem:[#allocation5 + $0x180] ss:$8 sps:$4 sm:$0xff]   ;;  %v1329_v7 = vld [vmem:[#allocation7 + $0x38] sm:$0xff]   ;;  %p1449_p12 = scmp.lt.s32.totalorder %s990_s12, %s990_s12 }
  0x56   :  { %570 = vmatpush1.bf16.msra.mxu1 %v1263_v23  ;;  %530 = vmatprep.subr.bf16.mxu0 %v1264_v24  ;;  %v1330_v8 = vld [vmem:[#allocation7 + $0x70] sm:$0xff]   ;;  %v1332_v10 = vld [vmem:[#allocation7 + $0x68] sm:$0xff]   ;;  %v1334_v12 = vld [vmem:[#allocation7 + $0x60] sm:$0xff]   ;;  %v1481_v23 = vmov 0.0  }
  0x57   :  { %571 = vmatprep.subr.bf16.mxu1 %v1266_v25  ;;  %v1331_v9 = vld [vmem:[#allocation7 + $0x30] sm:$0xff]   ;;  %v1333_v11 = vld [vmem:[#allocation7 + $0x28] sm:$0xff]   ;;  %v1335_v13 = vld [vmem:[#allocation7 + $0x20] sm:$0xff]  }
  0x58   :  { %v1336_v14 = vld [vmem:[#allocation7 + $0x58] sm:$0xff]   ;;  %v1338_v16 = vld [vmem:[#allocation7 + $0x50] sm:$0xff]   ;;  %v1340_v18 = vld [vmem:[#allocation7 + $0x48] sm:$0xff]  }
  0x59   :  { %531 = vmatpush1.bf16.msra.mxu0 %v1268_v26  ;;  %v1337_v15 = vld [vmem:[#allocation7 + $0x18] sm:$0xff]   ;;  %v1339_v17 = vld [vmem:[#allocation7 + $0x10] sm:$0xff]   ;;  %v1341_v19 = vld [vmem:[#allocation7 + $0x8] sm:$0xff]  }
  0x5a   :  { %572 = vmatpush1.bf16.msra.mxu1 %v1269_v27  ;;  %532 = vmatprep.subr.bf16.mxu0 %v1270_v28  ;;  %v1342_v20 = vld [vmem:[#allocation7 + $0x40] sm:$0xff]   ;;  %v795_v22 = vld [vmem:[#allocation8 + $0x78] sm:$0xff]  ;;  %v794_v24 = vld [vmem:[#allocation8 + $0x70] sm:$0xff] }
  0x5b   :  { %573 = vmatprep.subr.bf16.mxu1 %v1272_v29  ;;  %v1343_v21 = vld [vmem:[#allocation7] sm:$0xff]   ;;  %v793_v25 = vld [vmem:[#allocation8 + $0x68] sm:$0xff]  ;;  %v791_v27 = vld [vmem:[#allocation8 + $0x58] sm:$0xff] }
  0x5c   :  { %v792_v26 = vld [vmem:[#allocation8 + $0x60] sm:$0xff]  ;;  %v790_v28 = vld [vmem:[#allocation8 + $0x50] sm:$0xff]  ;;  %v789_v29 = vld [vmem:[#allocation8 + $0x48] sm:$0xff] }
  0x5d   :  { %533 = vmatpush1.bf16.msra.mxu0 %v1274_v30  ;;  %v788_v30 = vld [vmem:[#allocation8 + $0x40] sm:$0xff] }
  0x5e   :  { %574 = vmatpush1.bf16.msra.mxu1 %v1275_v31  ;;  %534 = vmatprep.subr.bf16.mxu0 %v1276_v32  ;;  %v787_v31 = vld [vmem:[#allocation8 + $0x38] sm:$0xff]  ;;  %v786_v32 = vld [vmem:[#allocation8 + $0x30] sm:$0xff] }
  0x5f   :  { %575 = vmatprep.subr.bf16.mxu1 %v1278_v33  ;;  %v785_v33 = vld [vmem:[#allocation8 + $0x28] sm:$0xff] }
  0x61   :  { %535 = vmatpush2.bf16.msra.mxu0 %v1280_v34  ;;  %v174_v34 = vlaneseq }
  0x62   :  { %576 = vmatpush2.bf16.msra.mxu1 %v1281_v35  ;;  %536 = vmatprep.subr.bf16.mxu0 %v1282_v36 }
  0x63   :  { %577 = vmatprep.subr.bf16.mxu1 %v1284_v37  ;;  %v175_v35 = vshrl.u32 %v174_v34, 7  ;;  %v172_v37 = vld [vmem:[%s1627_s3] sm:$0x3] }
  0x65   :  { %537 = vmatpush2.bf16.msra.mxu0 %v1286_v38  ;;  %v176_v36 = vsub.s32 0, %v175_v35  ;;  %v180_v38 = vsub.s32 1, %v175_v35 }
  0x66   :  { %578 = vmatpush2.bf16.msra.mxu1 %v1287_v39  ;;  %538 = vmatprep.subr.bf16.mxu0 %v1288_v40 }
  0x67   :  { %579 = vmatprep.subr.bf16.mxu1 %v1290_v41  ;;  %v177_v39 = vrot.slane %v172_v37, %v176_v36  ;;  %v181_v40 = vrot.slane %v172_v37, %v180_v38 }
  0x69   :  { %539 = vmatpush2.bf16.msra.mxu0 %v1292_v42 }
  0x6a   :  { %580 = vmatpush2.bf16.msra.mxu1 %v1293_v43  ;;  %540 = vmatprep.subr.bf16.mxu0 %v1294_v44 }
  0x6b   :  { %581 = vmatprep.subr.bf16.mxu1 %v1296_v45 }
  0x6d   :  { %541 = vmatpush2.bf16.msra.mxu0 %v1298_v46 }
  0x6e   :  { %582 = vmatpush2.bf16.msra.mxu1 %v1299_v47  ;;  %542 = vmatprep.subr.bf16.mxu0 %v1300_v51 }
  0x6f   :  { %583 = vmatprep.subr.bf16.mxu1 %v1302_v53 }
  0x71   :  { %543 = vmatpush2.bf16.msra.mxu0 %v1304_v54 }
  0x72   :  { %584 = vmatpush2.bf16.msra.mxu1 %v1305_v55  ;;  %544 = vmatprep.subr.bf16.mxu0 %v1306_v56 }
  0x73   :  { %585 = vmatprep.subr.bf16.mxu1 %v1308_v57  ;;  %v784_v57 = vld [vmem:[#allocation8 + $0x20] sm:$0xff] }
  0x75   :  { %545 = vmatpush2.bf16.msra.mxu0 %v1310_v58  ;;  %v783_v58 = vld [vmem:[#allocation8 + $0x18] sm:$0xff] }
  0x76   :  { %586 = vmatpush2.bf16.msra.mxu1 %v1311_v59  ;;  %546 = vmatprep.subr.bf16.mxu0 %v1312_v60  ;;  %v782_v59 = vld [vmem:[#allocation8 + $0x10] sm:$0xff]  ;;  %v781_v60 = vld [vmem:[#allocation8 + $0x8] sm:$0xff] }
  0x77   :  { %587 = vmatprep.subr.bf16.mxu1 %v1314_v61  ;;  %v780_v61 = vld [vmem:[#allocation8] sm:$0xff] }
  0x79   :  { %547 = vmatpush2.bf16.msra.mxu0 %v1316_v62  ;;  %v889_v62 = vld [vmem:[#allocation10 + $0x78] sm:$0xff] }
  0x7a   :  { %588 = vmatpush2.bf16.msra.mxu1 %v1317_v63  ;;  %548 = vmatprep.subr.bf16.mxu0 %v1318_v0  ;;  %v888_v63 = vld [vmem:[#allocation10 + $0x70] sm:$0xff]  ;;  %v887_v0 = vld [vmem:[#allocation10 + $0x68] sm:$0xff] }
  0x7b   :  { %589 = vmatprep.subr.bf16.mxu1 %v1320_v1  ;;  %v886_v1 = vld [vmem:[#allocation10 + $0x60] sm:$0xff] }
  0x7d   :  { %549 = vmatpush2.bf16.msra.mxu0 %v1322_v2  ;;  %v885_v2 = vld [vmem:[#allocation10 + $0x58] sm:$0xff] }
  0x7e   :  { %590 = vmatpush2.bf16.msra.mxu1 %v1323_v3  ;;  %1088 = vmatprep.subr.bf16.mxu0 %v1328_v4  ;;  %v884_v3 = vld [vmem:[#allocation10 + $0x50] sm:$0xff]  ;;  %v883_v4 = vld [vmem:[#allocation10 + $0x48] sm:$0xff] }
  0x7f   :  { %1144 = vmatprep.subr.mxu1 %v1481_v23 }
  0x80   :  { %551 = vmatmul.mubr.bf16.vlgmr.msra.gmra.mxu0 %v1000_v5  ;;  %v882_v5 = vld [vmem:[#allocation10 + $0x40] sm:$0xff] }
  0x81   :  { %592 = vmatmul.mubr.bf16.vlgmr.msra.gmra.mxu1 %v1002_v6  ;;  %1089 = vmatpush3.bf16.msra.mxu0 %v1329_v7  ;;  %v881_v6 = vld [vmem:[#allocation10 + $0x38] sm:$0xff]  ;;  %v880_v7 = vld [vmem:[#allocation10 + $0x30] sm:$0xff] }
  0x82   :  { %1090 = vmatprep.subr.bf16.mxu0 %v1330_v8  ;;  %1145 = vmatpush3.msra.mxu1 %v795_v22  ;;  %v879_v8 = vld [vmem:[#allocation10 + $0x28] sm:$0xff]  ;;  %v890_v22 = vld [vmem:[%s1625_s1] sm:$0xff] }
  0x83   :  { %1146 = vmatprep.subr.mxu1 %v1481_v23  ;;  %1176 = vmatprep.mubr.msk.f32.mxu1 %vm1482_vm0, %v1481_v23 }
  0x84   :  { %1147 = vmatpush3.msra.mxu1 %v794_v24  ;;  %v1483_v24 = vmov 0  }
  0x85   :  { %1091 = vmatpush3.bf16.msra.mxu0 %v1331_v9  ;;  %1148 = vmatprep.subr.mxu1 %v1481_v23  ;;  %v878_v9 = vld [vmem:[#allocation10 + $0x20] sm:$0xff] }
  0x86   :  { %1092 = vmatprep.subr.bf16.mxu0 %v1332_v10  ;;  %1149 = vmatpush3.msra.mxu1 %v793_v25  ;;  %v877_v10 = vld [vmem:[#allocation10 + $0x18] sm:$0xff]  ;;  %v1085_v25 = vld [vmem:[%s1631_s7] ss:$0 sm:$0xff]  ;;  %s1444_s7 = scalar_lea.vmem %s990_s12, 128 }
  0x87   :  { %1150 = vmatprep.subr.mxu1 %v1481_v23  ;;  %1227 = vset.pattern.permute.xlu0 %v1483_v24  ;;  %p1445_p11 = scmp.ne.s32.totalorder %s990_s12, %s1444_s7  ;;  %p1450_p13 = scmp.lt.s32.totalorder %s1444_s7, %s1444_s7 }
  0x88   :  { %1151 = vmatpush3.msra.mxu1 %v792_v26  ;;  %894 = vperm.xlu0 %1227, %v890_v22  }
  0x89   :  { %1093 = vmatpush3.bf16.msra.mxu0 %v1333_v11  ;;  %1152 = vmatprep.subr.mxu1 %v1481_v23  ;;  %p1451_p0 = por %p1450_p13, %p1449_p12 }
  0x8a   :  { %1094 = vmatprep.subr.bf16.mxu0 %v1334_v12  ;;  %1153 = vmatpush3.msra.mxu1 %v791_v27  ;;  %v1068_v12 = vld [vmem:[%s1629_s5] ss:$0 sm:$0xff] }
  0x8b   :  { %1154 = vmatprep.subr.mxu1 %v1481_v23  ;;  %p1452_p1 = pnand %p1451_p0, %p1445_p11 }
  0x8c   :  { %1155 = vmatpush3.msra.mxu1 %v790_v28 }
  0x8d   :  { %1095 = vmatpush3.bf16.msra.mxu0 %v1335_v13  ;;  %1156 = vmatprep.subr.mxu1 %v1481_v23 }
  0x8e   :  { %1096 = vmatprep.subr.bf16.mxu0 %v1336_v14  ;;  %1157 = vmatpush3.msra.mxu1 %v789_v29 }
  0x8f   :  { %1158 = vmatprep.subr.mxu1 %v1481_v23 }
  0x90   :  { %1159 = vmatpush3.msra.mxu1 %v788_v30 }
  0x91   :  { %1097 = vmatpush3.bf16.msra.mxu0 %v1337_v15  ;;  %1160 = vmatprep.subr.mxu1 %v1481_v23 }
  0x92   :  { %1098 = vmatprep.subr.bf16.mxu0 %v1338_v16  ;;  %1161 = vmatpush3.msra.mxu1 %v787_v31 }
  0x93   :  { %1162 = vmatprep.subr.mxu1 %v1481_v23 }
  0x94   :  { %1163 = vmatpush3.msra.mxu1 %v786_v32 }
  0x95   :  { %1099 = vmatpush3.bf16.msra.mxu0 %v1339_v17  ;;  %1164 = vmatprep.subr.mxu1 %v1481_v23 }
  0x96   :  { %1100 = vmatprep.subr.bf16.mxu0 %v1340_v18  ;;  %1165 = vmatpush3.msra.mxu1 %v785_v33  ;;  %v1087_v33 = vld [vmem:[%s1634_s10] ss:$0 sm:$0xff] }
  0x97   :  { %1166 = vmatprep.subr.mxu1 %v1481_v23 }
  0x98   :  { %1167 = vmatpush3.msra.mxu1 %v784_v57 }
  0x99   :  { %1101 = vmatpush3.bf16.msra.mxu0 %v1341_v19  ;;  %1168 = vmatprep.subr.mxu1 %v1481_v23  ;;  %v876_v19 = vld [vmem:[#allocation10 + $0x10] sm:$0xff] }
  0x9a   :  { %1102 = vmatprep.subr.bf16.mxu0 %v1342_v20  ;;  %1169 = vmatpush3.msra.mxu1 %v783_v58  ;;  %v875_v20 = vld [vmem:[#allocation10 + $0x8] sm:$0xff] }
  0x9b   :  { %1170 = vmatprep.subr.mxu1 %v1481_v23 }
  0x9c   :  { %1171 = vmatpush3.msra.mxu1 %v782_v59 }
  0x9d   :  { %1103 = vmatpush3.bf16.msra.mxu0 %v1343_v21  ;;  %1172 = vmatprep.subr.mxu1 %v1481_v23  ;;  %v874_v21 = vld [vmem:[#allocation10] sm:$0xff] }
  0x9e   :  { %1179 = vmatprep.subr.mxu0 %v1481_v23  ;;  %1173 = vmatpush3.msra.mxu1 %v781_v60 }
  0x9f   :  { %1174 = vmatprep.subr.mxu1 %v1481_v23 }
  0xa0   :  { %1175 = vmatpush3.msra.mxu1 %v780_v61 }
 0x103   :  { %v895_v30 = vpop.permute.xlu0 %894 }
 0x140   :  { %v552_v41 = vpop.f32.mrf.mxu0 }
 0x141   :  { %v593_v42 = vpop.f32.mrf.mxu1  ;;  %v553_v43 = vadd.f32 %v552_v41, %v177_v39 }
 0x142   :  { %v554_v44 = vpop.f32.mrf.mxu0 }
 0x143   :  { %v595_v45 = vpop.f32.mrf.mxu1  ;;  %v594_v46 = vadd.f32 %v593_v42, %v553_v43  ;;  %v555_v47 = vadd.f32 %v554_v44, %v181_v40 }
 0x144   :  { %v556_v48 = vpop.f32.mrf.mxu0 }
 0x145   :  { %v597_v49 = vpop.f32.mrf.mxu1  ;;  %v596_v50 = vadd.f32 %v595_v45, %v555_v47  ;;  %v600_v51 = vmax.f32 %v594_v46, 0.0 }
 0x146   :  { %v557_v52 = vpop.f32.mrf.mxu0 }
 0x147   :  { %v598_v53 = vpop.f32.mrf.mxu1  ;;  %v601_v54 = vmax.f32 %v596_v50, 0.0  ;;  %v602_v56 = vpack.c.bf16 %v600_v51, %v600_v51 }
 0x149   :  { %v603_v55 = vpack.c.bf16 %v601_v54, %v601_v54 }
 0x14b   :  { %771 = vmatprep.mubr.bf16.mxu0 %v603_v55 }
 0x14c   :  { %772 = vmatmul.mubr.bf16.vlgmr.msra.gmra.mxu0 %v602_v56 }
 0x14d   :  { %1211 = vmatprep.mubr.msk.f32.mxu0 %vm1482_vm0, %v1481_v23  ;;  %1180 = vmatpush3.msra.mxu0 %v889_v62 }
 0x14e   :  { %1181 = vmatprep.subr.mxu0 %v1481_v23 }
 0x14f   :  { %1182 = vmatpush3.msra.mxu0 %v888_v63 }
 0x150   :  { %1183 = vmatprep.subr.mxu0 %v1481_v23 }
 0x151   :  { %1184 = vmatpush3.msra.mxu0 %v887_v0 }
 0x152   :  { %1185 = vmatprep.subr.mxu0 %v1481_v23 }
 0x153   :  { %1186 = vmatpush3.msra.mxu0 %v886_v1 }
 0x154   :  { %1187 = vmatprep.subr.mxu0 %v1481_v23 }
 0x155   :  { %1188 = vmatpush3.msra.mxu0 %v885_v2 }
 0x156   :  { %1189 = vmatprep.subr.mxu0 %v1481_v23 }
 0x157   :  { %1190 = vmatpush3.msra.mxu0 %v884_v3 }
 0x158   :  { %1191 = vmatprep.subr.mxu0 %v1481_v23 }
 0x159   :  { %1192 = vmatpush3.msra.mxu0 %v883_v4 }
 0x15a   :  { %1193 = vmatprep.subr.mxu0 %v1481_v23 }
 0x15b   :  { %1194 = vmatpush3.msra.mxu0 %v882_v5 }
 0x15c   :  { %1195 = vmatprep.subr.mxu0 %v1481_v23 }
 0x15d   :  { %1196 = vmatpush3.msra.mxu0 %v881_v6 }
 0x15e   :  { %1197 = vmatprep.subr.mxu0 %v1481_v23 }
 0x15f   :  { %1198 = vmatpush3.msra.mxu0 %v880_v7 }
 0x160   :  { %1199 = vmatprep.subr.mxu0 %v1481_v23 }
 0x161   :  { %1200 = vmatpush3.msra.mxu0 %v879_v8 }
 0x162   :  { %1201 = vmatprep.subr.mxu0 %v1481_v23 }
 0x163   :  { %1202 = vmatpush3.msra.mxu0 %v878_v9 }
 0x164   :  { %1203 = vmatprep.subr.mxu0 %v1481_v23 }
 0x165   :  { %1204 = vmatpush3.msra.mxu0 %v877_v10 }
 0x166   :  { %1205 = vmatprep.subr.mxu0 %v1481_v23 }
 0x167   :  { %1206 = vmatpush3.msra.mxu0 %v876_v19 }
 0x168   :  { %1207 = vmatprep.subr.mxu0 %v1481_v23 }
 0x169   :  { %1208 = vmatpush3.msra.mxu0 %v875_v20 }
 0x16a   :  { %1209 = vmatprep.subr.mxu0 %v1481_v23  ;;  %v1086_v23 = vld [vmem:[%s1633_s9] ss:$0 sm:$0xff] }
 0x16b   :  { %1210 = vmatpush3.msra.mxu0 %v874_v21  ;;  %v903_v31 = vmul.f32 %v1086_v23, %v895_v30 }
 0x20c   :  { %v1104_v11 = vpop.f32.mrf.mxu0 }
 0x20e   :  { %v1105_v13 = vpop.f32.mrf.mxu0 }
 0x20f   :  { %v1106_v14 = vadd.f32 %v1105_v13, %v1104_v11 }
 0x210   :  { %v1107_v15 = vpop.f32.mrf.mxu0 }
 0x211   :  { %v774_v16 = vadd.f32 %v1106_v14, %v1068_v12 }
 0x212   :  { %v1108_v17 = vpop.f32.mrf.mxu0 }
 0x213   :  { %v779_v18 = vmax.f32 %v774_v16, 0.0 }
 0x215   :  { %1177 = vmatmul.mubr.f32.vlgmr.msra.gmra.mxu1 %v779_v18 }
 0x2d5   :  { %v869_v26 = vpop.f32.mrf.mxu1 }
 0x2d6   :  { %v870_v27 = vadd.f32 %v1085_v25, %v869_v26 }
 0x2d7   :  { %v1178_v28 = vpop.f32.mrf.mxu1 }
 0x2d8   :  { %v873_v29 = vmax.f32 %v870_v27, 0.0 }
 0x2da   :  { %1212 = vmatmul.mubr.f32.vlgmr.msra.gmra.mxu0 %v873_v29 }
 0x39a   :  { %v970_v32 = vpop.f32.mrf.mxu0 }
 0x39b   :  { %v971_v34 = vadd.f32 %v970_v32, %v903_v31 }
 0x39c   :  { %v1213_v35 = vpop.f32.mrf.mxu0 }
 0x39d   :  { %v981_v36 = vadd.f32 %v1087_v33, %v971_v34 }
 0x39f   :  { %982 = vst [vmem:[#allocation11] sm:$0xff] %v981_v36 }
 0x3a0   :  { %1455 = shalt.err (!%p1452_p1)
}
 0x3a1   :  { %992 = dma.vmem_to_hbm [thread:$0]  %s990_s12, 128, %s1635_s11, [#allocation4]  }
 0x3a2   :  { %1470 = dma.done.wait [#allocation4], 128  }
 0x3a3   :  { %1471 = vsyncadd [#allocation4], 4294967168 }
 0x3a4   :  { %996 = vsyncpa [#allocation3], 1 }
 0x3a5   :  { %997 = vsyncpa [#allocation6], 1 }
 0x3a6   :  { %998 = vsyncpa [#allocation9], 1 }
 0x3a7   :  { %999 = vsyncpa [#allocation4], 1 }

</bundles_post_ra>
